<compile_context>
chip_gen: v7x
topology: tpu7x:2x2x1
jax: 0.10.0
libtpu: 0.0.40
codegen_flags: <defaults>
</compile_context>

<pallas_src>
import functools

import jax
import jax.numpy as jnp
from jax import lax
from jax.experimental import pallas as pl
from jax.experimental.pallas import tpu as pltpu


# ----------------------------------------------------------------------------
# Kernel
# ----------------------------------------------------------------------------
def _triaffine_kernel(x_ref, y_ref, z_ref, w_ref, o_ref, wz3_ref, *acc_refs,
                      tz, s_len, dx, dyp, nk, cdtype):
    ki = pl.program_id(3)

    # ---- k-contraction: (Tz, Tk) @ (Tk, Dx*Dyp), one lane-dense MXU matmul.
    part = jnp.dot(z_ref[...], w_ref[...], preferred_element_type=jnp.float32)

    if nk > 1:
        acc_ref, = acc_refs

        @pl.when(ki == 0)
        def _():
            acc_ref[...] = part

        @pl.when(ki > 0)
        def _():
            acc_ref[...] = acc_ref[...] + part

    @pl.when(ki == nk - 1)
    def _finalize():
        wz = part if nk == 1 else acc_refs[0][...]
        # (Tz, Dx*Dyp) -> (Tz, Dx, Dyp); Dyp is a multiple of 128 so the split
        # stays lane-aligned.  Done once per grid step, into a bf16 scratch.
        wz3_ref[...] = wz.astype(cdtype).reshape(tz, dx, dyp)

        xm = x_ref[...]                       # (S, Dx)   compute dtype
        yt = y_ref[...]                       # (Dyp, S)  compute dtype

        def per_z_row(t, carry):
            row0 = pl.multiple_of(t * s_len, 8)
            # i-contraction for one z row: (S, Dx) @ (Dx, Dyp)
            tmp = jnp.dot(xm, wz3_ref[t], preferred_element_type=jnp.float32)
            # j-contraction: (S, Dyp) @ (Dyp, S) -> one (S, S) output slab
            st = jnp.dot(tmp.astype(cdtype), yt,
                         preferred_element_type=jnp.float32)
            o_ref[pl.ds(row0, s_len), :] = st.astype(o_ref.dtype)
            return carry

        lax.fori_loop(0, tz, per_z_row, 0)


# ----------------------------------------------------------------------------
# Tiling / VMEM planning
# ----------------------------------------------------------------------------
def _vmem_budget():
    """Generation-aware (budget, vmem_limit) in bytes."""
    try:
        cap = int(pltpu.get_tpu_info().vmem_capacity_bytes)
    except Exception:
        cap = 64 * 1024 * 1024                      # conservative fallback
    if cap >= 100 * 1024 * 1024:                    # v5e / v6e: 128 MiB VMEM
        return 88 * 1024 * 1024, 100 * 1024 * 1024
    return 26 * 1024 * 1024, 44 * 1024 * 1024       # v7x: 64 MiB VMEM


def _plan_tiles(S8, Dx, Dyp, Dz, in_bytes, out_bytes, budget):
    """Pick (Tz, Tk, Dzp, nk) so every double-buffered block fits the budget."""
    flat = Dx * Dyp

    # k (Dz) tiling: keep the double-buffered weight block under ~1/3 budget.
    w_budget = budget // 3
    if 2 * in_bytes * Dz * flat <= w_budget:
        Tk, Dzp = Dz, Dz
    else:
        Tk = max(128, (w_budget // (2 * in_bytes * flat)) // 128 * 128)
        Dzp = ((Dz + Tk - 1) // Tk) * Tk
    nk = Dzp // Tk

    def est(tz):
        blocks = (2 * in_bytes * (S8 * Dx + Dyp * S8 + tz * Tk + Tk * flat)
                  + 2 * out_bytes * tz * S8 * S8)
        scratch = 2 * tz * flat + (4 * tz * flat if nk > 1 else 0)
        interm = 4 * tz * flat + 6 * S8 * Dyp + 4 * S8 * S8 \
            + in_bytes * (S8 * Dx + Dyp * S8)
        return blocks + scratch + interm

    cands = sorted({d for d in range(8, S8 + 1, 8) if S8 % d == 0} | {S8},
                   reverse=True)
    for tz in cands:
        if est(tz) <= budget:
            return tz, Tk, Dzp, nk
    raise ValueError(
        "Triaffine Pallas kernel: no z-tile fits the VMEM budget "
        f"({budget} bytes) for S={S8}, Dx={Dx}, Dy(padded)={Dyp}, Dz={Dz}.")


# ----------------------------------------------------------------------------
# Wrapper
# ----------------------------------------------------------------------------
def _pad_to(a, axis, new):
    pad = new - a.shape[axis]
    if pad == 0:
        return a
    widths = [(0, 0)] * a.ndim
    widths[axis] = (0, pad)
    return jnp.pad(a, widths)


def triaffine_pallas(x, y, z, weight, *, n_in, scale=0, bias_x=False,
                     bias_y=False, out_dtype=None,
                     compute_dtype=jnp.bfloat16):
    """x, y, z: [B, S, n_in]; weight: [n_out, n_in+bias_x, n_in, n_in+bias_y].

    out_dtype defaults to the input dtype (module semantics); pass
    jnp.bfloat16 to halve the O(S^3) HBM writeback when the caller allows it.
    """
    out_dtype = x.dtype if out_dtype is None else out_dtype

    if bias_x:
        x = jnp.concatenate([x, jnp.ones_like(x[..., :1])], axis=-1)
    if bias_y:
        y = jnp.concatenate([y, jnp.ones_like(y[..., :1])], axis=-1)

    B, S, Dx = x.shape
    Dy = y.shape[-1]
    n_out, Wx, Dz, Wy = weight.shape
    assert (Wx, Wy) == (Dx, Dy) and Dz == z.shape[-1]

    # Fold the scale into the (small) weight once, in XLA.
    w = weight * (1.0 / (float(n_in) ** float(scale)))

    # Zero-pad seq to a sublane multiple and Dy to a lane multiple; padded
    # rows/cols contribute exactly zero and are sliced off at the end.
    S8 = ((S + 7) // 8) * 8
    Dyp = ((Dy + 127) // 128) * 128
    x = _pad_to(x, 1, S8)
    y = _pad_to(_pad_to(y, 1, S8), 2, Dyp)
    z = _pad_to(z, 1, S8)
    w = _pad_to(w, 3, Dyp)

    in_bytes = jnp.dtype(compute_dtype).itemsize
    out_bytes = jnp.dtype(out_dtype).itemsize
    budget, vmem_limit = _vmem_budget()
    Tz, Tk, Dzp, nk = _plan_tiles(S8, Dx, Dyp, Dz, in_bytes, out_bytes, budget)
    nz = S8 // Tz

    # Zero-pad the contracted k axis if it is tiled.
    if Dzp != Dz:
        z = _pad_to(z, 2, Dzp)
        w = _pad_to(w, 2, Dzp)

    # One-time XLA-side permute/cast:
    #   W2[o, k, i*Dyp + j] = W[o, i, k, j] / n_in**scale
    w2 = jnp.transpose(w, (0, 2, 1, 3)).reshape(n_out, Dzp, Dx * Dyp)
    w2 = w2.astype(compute_dtype)
    xq = x.astype(compute_dtype)                        # (B, S8, Dx)
    yTq = jnp.transpose(y, (0, 2, 1)).astype(compute_dtype)   # (B, Dyp, S8)
    zq = z.astype(compute_dtype)                        # (B, S8, Dzp)

    kernel = functools.partial(_triaffine_kernel, tz=Tz, s_len=S8, dx=Dx,
                               dyp=Dyp, nk=nk, cdtype=compute_dtype)

    scratch_shapes = [pltpu.VMEM((Tz, Dx, Dyp), compute_dtype)]
    if nk > 1:
        scratch_shapes.append(pltpu.VMEM((Tz, Dx * Dyp), jnp.float32))

    out4 = pl.pallas_call(
        kernel,
        out_shape=jax.ShapeDtypeStruct((B, n_out, S8 * S8, S8), out_dtype),
        grid=(n_out, B, nz, nk),
        in_specs=[
            pl.BlockSpec((None, S8, Dx), lambda o, b, zi, ki: (b, 0, 0)),
            pl.BlockSpec((None, Dyp, S8), lambda o, b, zi, ki: (b, 0, 0)),
            pl.BlockSpec((None, Tz, Tk), lambda o, b, zi, ki: (b, zi, ki)),
            pl.BlockSpec((None, Tk, Dx * Dyp), lambda o, b, zi, ki: (o, ki, 0)),
        ],
        out_specs=pl.BlockSpec((None, None, Tz * S8, S8),
                               lambda o, b, zi, ki: (b, o, zi, 0)),
        scratch_shapes=scratch_shapes,
        compiler_params=pltpu.CompilerParams(
            dimension_semantics=("parallel", "parallel", "parallel",
                                 "arbitrary"),
            vmem_limit_bytes=vmem_limit),
    )(xq, yTq, zq, w2)

    # Free, row-major-identical view of the flattened (z, x) rows.
    out = out4.reshape(B, n_out, S8, S8, S8)
    if S8 != S:
        out = out[:, :, :S, :S, :S]
    if n_out == 1:
        out = out[:, 0]
    return out


# ----------------------------------------------------------------------------
# Pure-JAX reference (mirrors the PyTorch forward, f32 highest precision)
# ----------------------------------------------------------------------------
def triaffine_ref(x, y, z, weight, *, n_in, scale=0, bias_x=False, bias_y=False):
    if bias_x:
        x = jnp.concatenate([x, jnp.ones_like(x[..., :1])], axis=-1)
    if bias_y:
        y = jnp.concatenate([y, jnp.ones_like(y[..., :1])], axis=-1)
    w = jnp.einsum('bzk,oikj->bozij', z, weight, precision='highest')
    s = jnp.einsum('bxi,bozij,byj->bozxy', x, w, y, precision='highest')
    if weight.shape[0] == 1:
        s = s[:, 0]
    return s / (float(n_in) ** float(scale))


if __name__ == "__main__":
    # Module config: Triaffine(n_in=32, n_out=2, scale=0, bias_x=True,
    #                          bias_y=True, decompose=False, init='normal')
    B, S, n_in, n_out = 2, 8, 32, 2
    bias_x = bias_y = True
    scale = 0

    key = jax.random.PRNGKey(0)
    kx, ky, kz, kw = jax.random.split(key, 4)
    x = jax.random.normal(kx, (B, S, n_in), dtype=jnp.float32)
    y = jax.random.normal(ky, (B, S, n_in), dtype=jnp.float32)
    z = jax.random.normal(kz, (B, S, n_in), dtype=jnp.float32)
    # init='normal' -> N(0, 0.25), deterministic
    weight = 0.25 * jax.random.normal(
        kw, (n_out, n_in + int(bias_x), n_in, n_in + int(bias_y)),
        dtype=jnp.float32)

    out = triaffine_pallas(x, y, z, weight, n_in=n_in, scale=scale,
                           bias_x=bias_x, bias_y=bias_y)
    out = jax.block_until_ready(out)

    ref = triaffine_ref(x, y, z, weight, n_in=n_in, scale=scale,
                        bias_x=bias_x, bias_y=bias_y)
    assert out.shape == ref.shape, (out.shape, ref.shape)
    max_err = float(jnp.max(jnp.abs(out - ref)))
    ref_scale = float(jnp.max(jnp.abs(ref)))
    # bf16 MXU inputs with f32 accumulation: expect well under 1% of the
    # score scale vs the f32-highest reference.
    assert max_err <= 2e-2 * ref_scale + 1e-3, (max_err, ref_scale)

    print("KERNEL_OK")
</pallas_src>

<mosaic_0001>
module attributes {stable_mosaic.version = 11 : i64} {
  func.func @_triaffine_kernel(%arg0: i32, %arg1: i32, %arg2: i32, %arg3: i32, %arg4: memref<1x8x33xbf16, #tpu.memory_space<vmem>>, %arg5: memref<1x128x8xbf16, #tpu.memory_space<vmem>>, %arg6: memref<1x8x32xbf16, #tpu.memory_space<vmem>>, %arg7: memref<1x32x4224xbf16, #tpu.memory_space<vmem>>, %arg8: memref<1x1x64x8xf32, #tpu.memory_space<vmem>>, %arg9: memref<8x33x128xbf16, #tpu.memory_space<vmem>>) attributes {dimension_semantics = [#tpu.dimension_semantics<parallel>, #tpu.dimension_semantics<parallel>, #tpu.dimension_semantics<parallel>, #tpu.dimension_semantics<arbitrary>], iteration_bounds = array<i64: 2, 2, 1, 1>, scalar_prefetch = 0 : i64, scratch_operands = 1 : i64, tpu.core_type = #tpu.core_type<tc>, window_params = [{transform_indices = @transform_0, window_bounds = array<i64: 1, 8, 33>}, {transform_indices = @transform_1, window_bounds = array<i64: 1, 128, 8>}, {transform_indices = @transform_2, window_bounds = array<i64: 1, 8, 32>}, {transform_indices = @transform_3, window_bounds = array<i64: 1, 32, 4224>}, {transform_indices = @transform_4, window_bounds = array<i64: 1, 1, 64, 8>}]} {
    %c0 = arith.constant 0 : index
    %c0_0 = arith.constant 0 : index
    %c0_1 = arith.constant 0 : index
    %0 = vector.load %arg6[%c0, %c0_0, %c0_1] : memref<1x8x32xbf16, #tpu.memory_space<vmem>>, vector<1x8x32xbf16>
    %1 = vector.shape_cast %0 : vector<1x8x32xbf16> to vector<8x32xbf16>
    %c0_2 = arith.constant 0 : index
    %c0_3 = arith.constant 0 : index
    %c0_4 = arith.constant 0 : index
    %2 = vector.load %arg7[%c0_2, %c0_3, %c0_4] : memref<1x32x4224xbf16, #tpu.memory_space<vmem>>, vector<1x32x4224xbf16>
    %3 = vector.shape_cast %2 : vector<1x32x4224xbf16> to vector<32x4224xbf16>
    %cst = arith.constant dense<0.000000e+00> : vector<8x4224xf32>
    %4 = tpu.matmul %1, %3, %cst {dimension_numbers = #tpu.dot_dimension_numbers<[1], [0], [0], [1], [0, 0, 1, 1], [], []>} : vector<8x32xbf16>, vector<32x4224xbf16>, vector<8x4224xf32> -> vector<8x4224xf32>
    %c0_i32 = arith.constant 0 : i32
    %5 = arith.cmpi eq, %arg3, %c0_i32 : i32
    %6 = arith.extui %5 : i1 to i32
    %c0_i32_5 = arith.constant 0 : i32
    %7 = arith.cmpi ne, %6, %c0_i32_5 : i32
    scf.if %7 {
      %8 = arith.truncf %4 : vector<8x4224xf32> to vector<8x4224xbf16>
      %9 = vector.shape_cast %8 : vector<8x4224xbf16> to vector<8x33x128xbf16>
      %c0_6 = arith.constant 0 : index
      %c0_7 = arith.constant 0 : index
      %c0_8 = arith.constant 0 : index
      %10 = vector.load %arg9[%c0_6, %c0_7, %c0_8] : memref<8x33x128xbf16, #tpu.memory_space<vmem>>, vector<8x33x128xbf16>
      tpu.vector_store %arg9[%c0_6, %c0_7, %c0_8], %9 {strides = array<i32>} : memref<8x33x128xbf16, #tpu.memory_space<vmem>>, vector<8x33x128xbf16>,
      %c0_9 = arith.constant 0 : index
      %c0_10 = arith.constant 0 : index
      %c0_11 = arith.constant 0 : index
      %11 = vector.load %arg4[%c0_9, %c0_10, %c0_11] : memref<1x8x33xbf16, #tpu.memory_space<vmem>>, vector<1x8x33xbf16>
      %12 = vector.shape_cast %11 : vector<1x8x33xbf16> to vector<8x33xbf16>
      %c0_12 = arith.constant 0 : index
      %c0_13 = arith.constant 0 : index
      %c0_14 = arith.constant 0 : index
      %13 = vector.load %arg5[%c0_12, %c0_13, %c0_14] : memref<1x128x8xbf16, #tpu.memory_space<vmem>>, vector<1x128x8xbf16>
      %14 = vector.shape_cast %13 : vector<1x128x8xbf16> to vector<128x8xbf16>
      %c0_i32_15 = arith.constant 0 : i32
      %c8_i32 = arith.constant 8 : i32
      %15 = arith.addi %c0_i32_15, %c8_i32 : i32
      %c1_i32 = arith.constant 1 : i32
      scf.for %arg10 = %c0_i32_15 to %15 step %c1_i32  : i32 {
        %c8_i32_17 = arith.constant 8 : i32
        %16 = arith.muli %arg10, %c8_i32_17 : i32
        %17 = tpu.assume_multiple %16, 8 : i32
        %18 = arith.index_cast %arg10 : i32 to index
        %c0_18 = arith.constant 0 : index
        %c0_19 = arith.constant 0 : index
        %19 = vector.load %arg9[%18, %c0_18, %c0_19] : memref<8x33x128xbf16, #tpu.memory_space<vmem>>, vector<1x33x128xbf16>
        %20 = vector.shape_cast %19 : vector<1x33x128xbf16> to vector<33x128xbf16>
        %cst_20 = arith.constant dense<0.000000e+00> : vector<8x128xf32>
        %21 = tpu.matmul %12, %20, %cst_20 {dimension_numbers = #tpu.dot_dimension_numbers<[1], [0], [0], [1], [0, 0, 1, 1], [], []>} : vector<8x33xbf16>, vector<33x128xbf16>, vector<8x128xf32> -> vector<8x128xf32>
        %22 = arith.truncf %21 : vector<8x128xf32> to vector<8x128xbf16>
        %cst_21 = arith.constant dense<0.000000e+00> : vector<8x8xf32>
        %23 = tpu.matmul %22, %14, %cst_21 {dimension_numbers = #tpu.dot_dimension_numbers<[1], [0], [0], [1], [0, 0, 1, 1], [], []>} : vector<8x128xbf16>, vector<128x8xbf16>, vector<8x8xf32> -> vector<8x8xf32>
        %c0_22 = arith.constant 0 : index
        %c0_23 = arith.constant 0 : index
        %24 = arith.index_cast %17 : i32 to index
        %c0_24 = arith.constant 0 : index
        %25 = vector.load %arg8[%c0_22, %c0_23, %24, %c0_24] : memref<1x1x64x8xf32, #tpu.memory_space<vmem>>, vector<1x1x8x8xf32>
        %26 = vector.shape_cast %25 : vector<1x1x8x8xf32> to vector<8x8xf32>
        %27 = vector.shape_cast %23 : vector<8x8xf32> to vector<1x1x8x8xf32>
        tpu.vector_store %arg8[%c0_22, %c0_23, %24, %c0_24], %27 {strides = array<i32>} : memref<1x1x64x8xf32, #tpu.memory_space<vmem>>, vector<1x1x8x8xf32>,
      }
      %c8_i32_16 = arith.constant 8 : i32
    } else {
    }
    return
  }
  func.func @transform_0(%arg0: i32, %arg1: i32, %arg2: i32, %arg3: i32) -> (i32, i32, i32) {
    %c0_i32 = arith.constant 0 : i32
    %c0_i32_0 = arith.constant 0 : i32
    %c0_i32_1 = arith.constant 0 : i32
    return %arg1, %c0_i32, %c0_i32_0 : i32, i32, i32
  }
  func.func @transform_1(%arg0: i32, %arg1: i32, %arg2: i32, %arg3: i32) -> (i32, i32, i32) {
    %c0_i32 = arith.constant 0 : i32
    %c0_i32_0 = arith.constant 0 : i32
    %c0_i32_1 = arith.constant 0 : i32
    return %arg1, %c0_i32, %c0_i32_0 : i32, i32, i32
  }
  func.func @transform_2(%arg0: i32, %arg1: i32, %arg2: i32, %arg3: i32) -> (i32, i32, i32) {
    %c0_i32 = arith.constant 0 : i32
    return %arg1, %arg2, %arg3 : i32, i32, i32
  }
  func.func @transform_3(%arg0: i32, %arg1: i32, %arg2: i32, %arg3: i32) -> (i32, i32, i32) {
    %c0_i32 = arith.constant 0 : i32
    %c0_i32_0 = arith.constant 0 : i32
    return %arg0, %arg3, %c0_i32 : i32, i32, i32
  }
  func.func @transform_4(%arg0: i32, %arg1: i32, %arg2: i32, %arg3: i32) -> (i32, i32, i32, i32) {
    %c0_i32 = arith.constant 0 : i32
    %c0_i32_0 = arith.constant 0 : i32
    return %arg1, %arg0, %arg2, %c0_i32 : i32, i32, i32, i32
  }
}

</mosaic_0001>

<bundles_post_ra>
// kernel: tpu_custom_call.1
= control target key start
LH: loop header
LB: loop body
LE: loop exit
PB: predicated region body
PF: predicated region fallthrough
CT: control target
= control target key end

     0   :  { %9 = vsyncpa [#allocation4], 0  ;;  %s3381_s0 = inlined_call_operand.vmem [shape: bf16[2,8,33], index: 0, kind: input, shape index: {}]   ;;  %s3382_s1 = inlined_call_operand.vmem [shape: bf16[2,128,8], index: 1, kind: input, shape index: {}]   ;;  %s3383_s2 = inlined_call_operand.vmem [shape: bf16[2,8,32], index: 2, kind: input, shape index: {}]   ;;  %s3384_s3 = inlined_call_operand.hbm [shape: bf16[2,32,4224], index: 3, kind: input, shape index: {}]   ;;  %s3385_s4 = inlined_call_operand.vmem [shape: f32[2,2,64,8], index: 4, kind: output, shape index: {}]  }
   0x1   :  { %11 = vsyncpa [#allocation4 + $0x1], 0  ;;  %s2946_s15 = smov 0   ;;  %s2948_s16 = smov 0  }
   0x2   :  { %s2950_s17 = smov 0   ;;  %s2952_s18 = smov 0  }
   0x3   :  { %s2954_s19 = smov 0   ;;  %s2956_s20 = smov 0  }
   0x4   :  { %s2958_s21 = smov 0   ;;  %s2960_s22 = smov 0  }
   0x5 LB: > { %s2387_s23 = sadd.s32 4294967295, %s2904_s22   ;;  %s39_s24 = sadd.s32 1, %s2896_s20  ;;  %s2904_s22 = sphi %s2960_s22, %s17_s22   ;;  %s2900_s21 = sphi %s2958_s21, %s3396_s21   ;;  %s2896_s20 = sphi %s2956_s20, %s3395_s20   ;;  %s2892_s19 = sphi %s2954_s19, %s3394_s19   ;;  %s2888_s18 = sphi %s2952_s18, %s3393_s18   ;;  %s2884_s17 = sphi %s2950_s17, %s3392_s17   ;;  %s2880_s16 = sphi %s2948_s16, %s3391_s16   ;;  %s2876_s15 = sphi %s2946_s15, %s3390_s15  }
   0x6   : > { %p41_p0 = scmp.ge.s32.totalorder %s39_s24, 2  ;;  %s43_s25 = sadd.s32 1, %s2900_s21 }
   0x7   : > { %s134_s26 = sadd.s32 1, %s2884_s17  ;;  %p141_p1 = scmp.ne.s32.totalorder %s2884_s17, %s2880_s16 }
   0x8   : > { %s3398_s24 = smov (%p41_p0, %s39_s24), 0  ;;  %s3400_s25 = smov (!%p41_p0, %s43_s25), %s2900_s21 }
   0x9   : > { %p142_p2 = scmp.eq.s32.totalorder %s2904_s22, 0  ;;  %p147_p3 = scmp.ne.s32.totalorder %s2880_s16, %s2876_s15 }
   0xa   : > { %p45_p4 = scmp.ge.s32.totalorder %s3400_s25, 2  ;;  %p148_p5 = scmp.eq.s32.totalorder %s2387_s23, 0 }
   0xb   : > { %p143_p6 = por %p142_p2, %p141_p1  ;;  %p2620_p8 = scmp.lt.s32.totalorder %s2904_s22, 4 }
   0xc   : > { %s3402_s25 = smov (%p45_p4, %s3400_s25), 0  ;;  %p2997_p7 = por %p148_p5, %p147_p3 }
   0xd   : > { %s129_s28 = ssub.s32 %s2900_s21, %s3402_s25  ;;  %s229_s29 = sand.u32 1, %s2884_s17  }
   0xe   : > { %p132_p9 = scmp.eq.s32.totalorder %s129_s28, 0  ;;  %s2611_s30 = smul.u32 528, %s229_s29 }
   0xf   : > { %p3005_p10 = pnand %p2620_p8, %p143_p6  ;;  %s2612_s7 = smul.u32 8448, %s2900_s21 }
  0x10   : > { %s3010_s6 = scalar_select %p132_p9, %s2884_s17, %s134_s26  }
  0x11   : > { %s233_s8 = scalar_lea.vmem [#allocation3], %s2611_s30  ;;  %s3016_s12 = scalar_lea.hbm %s3384_s3, %s2612_s7 }
  0x12   : > { %s243_s9 = sshll.u32 %s233_s8, 4  ;;  %s3020_s13 = scalar_lea.sflag [#allocation4], %s229_s29  ;;  %s3018_s9 = int_to_ptr.vmem [resolvable:$true] %s243_s9 }
  0x13   : > { %s2804_s14 = scalar_lea.hbm %s3016_s12, 8448  ;;  %p2806_p12 = pneg %p3005_p10 }
  0x14   : > { %p2805_p11 = scmp.ne.s32.totalorder %s3016_s12, %s2804_s14  ;;  %s2809_s26 = scalar_lea.hbm %s3384_s3, 16896 }
  0x15   : > { %p2810_p1 = scmp.lt.u32.totalorder %s3016_s12, %s3384_s3  ;;  %p2811_p2 = scmp.lt.u32.totalorder %s2809_s26, %s2804_s14 }
  0x16   : > { %p2807_p13 = pnand %p2806_p12, %p2805_p11  ;;  %p2813_p4 = scmp.lt.u32.totalorder %s2804_s14, %s3016_s12 }
  0x17   : > { %p2812_p3 = por %p2811_p2, %p2810_p1 }
  0x18   : > { %p2808_p0 = pneg %p2807_p13 }
  0x19   : > { %p2814_p5 = por %p2813_p4, %p2812_p3 }
  0x1b   : > { %p2815_p6 = pnand %p2814_p5, %p2808_p0 }
  0x1d   : > { %2818 = shalt.err (!%p2815_p6)
}
  0x1e   : > { %s2819_s29 = scalar_lea.vmem %s3018_s9, 8448  ;;  %s2910_s7 = smov [#allocation3]  }
  0x1f   : > { %p2820_p8 = scmp.ne.s32.totalorder %s3018_s9, %s2819_s29  ;;  %s2824_s8 = sshll.u32 %s2910_s7, 4  ;;  %s2825_s8 = int_to_ptr.vmem [resolvable:$false] %s2824_s8 }
  0x20   : > { %s2826_s10 = scalar_lea.vmem %s2825_s8, 16896  ;;  %p2827_p13 = scmp.lt.s32.totalorder %s3018_s9, %s2825_s8 }
  0x21   : > { %p2822_p9 = pnand %p2820_p8, %p2806_p12  ;;  %p2828_p1 = scmp.lt.s32.totalorder %s2826_s10, %s2819_s29 }
  0x23   : > { %p2823_p11 = pneg %p2822_p9  ;;  %p2829_p2 = por %p2828_p1, %p2827_p13 }
  0x25   : > { %p2830_p3 = pnand %p2829_p2, %p2823_p11 }
  0x27   : > { %2833 = shalt.err (!%p2830_p3)
}
  0x28   : > { %s2911_s11 = smov 2112   ;;  %s2912_s14 = smov 132  }
  0x29   : > { %2619 = dma.hbm_to_vmem [thread:$0]  (!%p3005_p10), %s3016_s12, 8448, %s3018_s9, %s3020_s13, %s2911_s11, %s2911_s11, %s2912_s14  }
  0x2a   : > { %p2392_p12 = scmp.ge.s32.totalorder %s2904_s22, 1  ;;  %p251_p0 = scmp.lt.s32.totalorder %s2904_s22, 5 }
  0x2c   : > { %p252_p4 = pnand %p2392_p12, %p251_p0 }
  0x2d   : > { %s257_s15 = sand.u32 (!%p252_p4), 1, %s2880_s16  }
  0x2e   : > { %255 = sbr.rel (%p252_p4) target bundleno = 814 (0x32e), region = 36  ;;  %s258_s26 = scalar_lea.sflag (!%p252_p4), [#allocation4], %s257_s15 }
  0x2f   : > { %s2613_s23 = smul.u32 (!%p252_p4), 528, %s257_s15 }
  0x31   : > { %s3051_s28 = scalar_lea.vmem (!%p252_p4), [#allocation3], %s2613_s23 }
  0x35   : > { %2871 = dma.done.wait (%p2997_p7), %s258_s26, 8448  }
  0x36   : > { %2873 = vsyncadd (%p2997_p7), %s258_s26, 4294958848  ;;  %p313_p10 = scmp.lt.s32.totalorder %s2888_s18, 1  ;;  %p336_p5 = scmp.lt.s32.totalorder %s2892_s19, 1  ;;  %v2913_v0 = vmov 0   ;;  %v2703_v1 = vld [vmem:[%s3051_s28 + $0x4] ss:$132 sps:$4 sm:$0xff]  }
  0x37   : > { %785 = vmatprep.mubr.bf16.mxu0 %v2913_v0  ;;  %826 = vmatprep.mubr.bf16.mxu1 %v2913_v0  ;;  %v2705_v2 = vld [vmem:[%s3051_s28 + $0xc] ss:$132 sps:$4 sm:$0xff]   ;;  %v2707_v3 = vld [vmem:[%s3051_s28] ss:$132 sps:$4 sm:$0xff]   ;;  %v2711_v6 = vld [vmem:[%s3051_s28 + $0x114] ss:$132 sps:$4 sm:$0xff]  }
  0x38   : > { %s3404_s18 = smov (!%p313_p10, %s2888_s18), 1  ;;  %s3406_s19 = smov (!%p336_p5, %s2892_s19), 1  ;;  %753 = vmatprep.subr.bf16.mxu0 %v2703_v1  ;;  %v2708_v4 = vld [vmem:[%s3051_s28 + $0x8] ss:$132 sps:$4 sm:$0xff]   ;;  %794 = vmatprep.subr.bf16.mxu1 %v2705_v2  ;;  %v2714_v8 = vld [vmem:[%s3051_s28 + $0x110] ss:$132 sps:$4 sm:$0xff]  }
  0x39   : > { %s2555_s27 = sshll.u32 %s3404_s18, 6  ;;  %s2397_s5 = sshll.u32 %s3406_s19, 3  ;;  %v2709_v5 = vld [vmem:[%s3051_s28 + $0x10c] ss:$132 sps:$4 sm:$0xff]   ;;  %754 = vmatpush1.bf16.msra.mxu0 %v2707_v3  ;;  %795 = vmatpush1.bf16.msra.mxu1 %v2708_v4  ;;  %vm749_vm0 = vcmask 261120   ;;  %vm2915_vm1 = vmmov 0  }
  0x3a   : > { %s2393_s9 = sshll.u32 %s3404_s18, 2  ;;  %s2398_s12 = sshll.u32 %s3404_s18, 4  ;;  %v2713_v7 = vld [vmem:[%s3051_s28 + $0x108] ss:$132 sps:$4 sm:$0xff]   ;;  %755 = vmatprep.subr.bf16.mxu0 %v2709_v5  ;;  %796 = vmatprep.subr.bf16.mxu1 %v2711_v6  ;;  %v2715_v27 = vld [vmem:[%s3051_s28 + $0x10] ss:$132 sps:$4 sm:$0xff]  }
  0x3b   : > { %s316_s29 = scalar_lea.vmem %s3381_s0, %s2393_s9  ;;  %s343_s7 = sadd.s32 %s2398_s12, %s2397_s5  ;;  %v2717_v28 = vld [vmem:[%s3051_s28 + $0x14] ss:$132 sps:$4 sm:$0xff]   ;;  %v2720_v30 = vld [vmem:[%s3051_s28 + $0x1c] ss:$132 sps:$4 sm:$0xff]   ;;  %v2726_v34 = vld [vmem:[%s3051_s28 + $0x124] ss:$132 sps:$4 sm:$0xff]  }
  0x3c   : > { %s3073_s11 = scalar_lea.vmem %s3382_s1, %s2555_s27  ;;  %s2399_s19 = sshll.u32 %s343_s7, 3  ;;  %v3087_v9 = vld [vmem:[%s316_s29] sm:$0xf]  ;;  %v2718_v29 = vld [vmem:[%s3051_s28 + $0x18] ss:$132 sps:$4 sm:$0xff]   ;;  %vm1972_vm2 = vcmask 1040384  }
  0x3d   : > { %s331_s15 = scalar_lea.vmem %s3383_s2, %s2393_s9  ;;  %s3082_s5 = scalar_lea.vmem %s3385_s4, %s2399_s19  ;;  %v3092_v11 = vld [vmem:[%s3073_s11] sm:$0xf]  ;;  %v3095_v12 = vld [vmem:[%s3073_s11 + $0x4] sm:$0xf]  ;;  %v3098_v13 = vld [vmem:[%s3073_s11 + $0x8] sm:$0xf]  ;;  %756 = vmatpush1.bf16.msra.mxu0 %v2713_v7  ;;  %797 = vmatpush1.bf16.msra.mxu1 %v2714_v8 }
  0x3e   : > { %v3089_v10 = vld [vmem:[%s331_s15] sm:$0xf]  ;;  %v3101_v14 = vld [vmem:[%s3073_s11 + $0xc] sm:$0xf]  ;;  %v3104_v15 = vld [vmem:[%s3073_s11 + $0x10] sm:$0xf]  ;;  %835 = vmatprep.subr.bf16.mxu0 %v2717_v28  ;;  %876 = vmatprep.subr.bf16.mxu1 %v2720_v30 }
  0x3f   : > { %v3107_v16 = vld [vmem:[%s3073_s11 + $0x14] sm:$0xf]  ;;  %v3110_v17 = vld [vmem:[%s3073_s11 + $0x18] sm:$0xf]  ;;  %v3113_v18 = vld [vmem:[%s3073_s11 + $0x1c] sm:$0xf] }
  0x40   : > { %v3116_v19 = vld [vmem:[%s3073_s11 + $0x20] sm:$0xf]  ;;  %v3119_v20 = vld [vmem:[%s3073_s11 + $0x24] sm:$0xf]  ;;  %v3122_v21 = vld [vmem:[%s3073_s11 + $0x28] sm:$0xf]  ;;  %2466 = vmatmul.mubr.msk.bf16.vlgmr.msra.gmra.mrb[0].mxu0 %vm749_vm0, %v3089_v10  ;;  %2467 = vmatmul.mubr.msk.bf16.vlgmr.msra.gmra.mrb[0].mxu1 %vm749_vm0, %v3089_v10 }
  0x41   : > { %v3125_v22 = vld [vmem:[%s3073_s11 + $0x2c] sm:$0xf]  ;;  %v3128_v23 = vld [vmem:[%s3073_s11 + $0x30] sm:$0xf]  ;;  %v3131_v24 = vld [vmem:[%s3073_s11 + $0x34] sm:$0xf]  ;;  %867 = vmatprep.mubr.bf16.mxu0 %v2913_v0  ;;  %908 = vmatprep.mubr.bf16.mxu1 %v2913_v0 }
  0x42   : > { %v3134_v25 = vld [vmem:[%s3073_s11 + $0x38] sm:$0xf]  ;;  %v3139_v26 = vld [vmem:[%s3073_s11 + $0x3c] sm:$0xf]  ;;  %836 = vmatpush1.bf16.msra.mxu0 %v2715_v27  ;;  %877 = vmatpush1.bf16.msra.mxu1 %v2718_v29  ;;  %v2724_v33 = vld [vmem:[%s3051_s28 + $0x120] ss:$132 sps:$4 sm:$0xff]  }
  0x43   : > { %v2721_v31 = vld [vmem:[%s3051_s28 + $0x118] ss:$132 sps:$4 sm:$0xff]   ;;  %v2729_v35 = vld [vmem:[%s3051_s28 + $0x24] ss:$132 sps:$4 sm:$0xff]   ;;  %878 = vmatprep.subr.bf16.mxu1 %v2726_v34  ;;  %v2732_v37 = vld [vmem:[%s3051_s28 + $0x2c] ss:$132 sps:$4 sm:$0xff]  }
  0x44   : > { %v2723_v32 = vld [vmem:[%s3051_s28 + $0x11c] ss:$132 sps:$4 sm:$0xff]   ;;  %v2730_v38 = vld [vmem:[%s3051_s28 + $0x28] ss:$132 sps:$4 sm:$0xff]   ;;  %v2738_v40 = vld [vmem:[%s3051_s28 + $0x134] ss:$132 sps:$4 sm:$0xff]  }
  0x45   : > { %837 = vmatprep.subr.bf16.mxu0 %v2723_v32  ;;  %v2727_v36 = vld [vmem:[%s3051_s28 + $0x20] ss:$132 sps:$4 sm:$0xff]   ;;  %v2735_v39 = vld [vmem:[%s3051_s28 + $0x12c] ss:$132 sps:$4 sm:$0xff]   ;;  %v2741_v43 = vld [vmem:[%s3051_s28 + $0x34] ss:$132 sps:$4 sm:$0xff]  }
  0x46   : > { %838 = vmatpush1.bf16.msra.mxu0 %v2721_v31  ;;  %879 = vmatpush1.bf16.msra.mxu1 %v2724_v33  ;;  %v2733_v41 = vld [vmem:[%s3051_s28 + $0x128] ss:$132 sps:$4 sm:$0xff]   ;;  %v2736_v42 = vld [vmem:[%s3051_s28 + $0x130] ss:$132 sps:$4 sm:$0xff]   ;;  %v2744_v44 = vld [vmem:[%s3051_s28 + $0x3c] ss:$132 sps:$4 sm:$0xff]  }
  0x47   : > { %917 = vmatprep.subr.bf16.mxu0 %v2729_v35  ;;  %958 = vmatprep.subr.bf16.mxu1 %v2732_v37  ;;  %v2739_v45 = vld [vmem:[%s3051_s28 + $0x30] ss:$132 sps:$4 sm:$0xff]   ;;  %v2742_v46 = vld [vmem:[%s3051_s28 + $0x38] ss:$132 sps:$4 sm:$0xff]   ;;  %v2750_v48 = vld [vmem:[%s3051_s28 + $0x144] ss:$132 sps:$4 sm:$0xff]  }
  0x48   : > { %v2747_v47 = vld [vmem:[%s3051_s28 + $0x13c] ss:$132 sps:$4 sm:$0xff]   ;;  %v2753_v51 = vld [vmem:[%s3051_s28 + $0x44] ss:$132 sps:$4 sm:$0xff]   ;;  %v2756_v52 = vld [vmem:[%s3051_s28 + $0x4c] ss:$132 sps:$4 sm:$0xff]  }
  0x49   : > { %2468 = vmatmul.mubr.msk.bf16.vlgmr.msra.gmra.mrb[4].mxu0 %vm749_vm0, %v3089_v10  ;;  %2469 = vmatmul.mubr.msk.bf16.vlgmr.msra.gmra.mrb[4].mxu1 %vm749_vm0, %v3089_v10  ;;  %v2745_v49 = vld [vmem:[%s3051_s28 + $0x138] ss:$132 sps:$4 sm:$0xff]   ;;  %v2748_v50 = vld [vmem:[%s3051_s28 + $0x140] ss:$132 sps:$4 sm:$0xff]   ;;  %v2754_v54 = vld [vmem:[%s3051_s28 + $0x48] ss:$132 sps:$4 sm:$0xff]  }
  0x4a   : > { %918 = vmatpush1.bf16.msra.mxu0 %v2727_v36  ;;  %959 = vmatpush1.bf16.msra.mxu1 %v2730_v38  ;;  %v2751_v53 = vld [vmem:[%s3051_s28 + $0x40] ss:$132 sps:$4 sm:$0xff]   ;;  %v2759_v55 = vld [vmem:[%s3051_s28 + $0x14c] ss:$132 sps:$4 sm:$0xff]   ;;  %v2762_v56 = vld [vmem:[%s3051_s28 + $0x154] ss:$132 sps:$4 sm:$0xff]  }
  0x4b   : > { %919 = vmatprep.subr.bf16.mxu0 %v2735_v39  ;;  %960 = vmatprep.subr.bf16.mxu1 %v2738_v40  ;;  %v2757_v57 = vld [vmem:[%s3051_s28 + $0x148] ss:$132 sps:$4 sm:$0xff]   ;;  %v2760_v58 = vld [vmem:[%s3051_s28 + $0x150] ss:$132 sps:$4 sm:$0xff]   ;;  %v2768_v60 = vld [vmem:[%s3051_s28 + $0x5c] ss:$132 sps:$4 sm:$0xff]  }
  0x4c   : > { %949 = vmatprep.mubr.bf16.mxu0 %v2913_v0  ;;  %990 = vmatprep.mubr.bf16.mxu1 %v2913_v0  ;;  %v2765_v59 = vld [vmem:[%s3051_s28 + $0x54] ss:$132 sps:$4 sm:$0xff]   ;;  %v2771_v63 = vld [vmem:[%s3051_s28 + $0x15c] ss:$132 sps:$4 sm:$0xff]   ;;  %v2774_v1 = vld [vmem:[%s3051_s28 + $0x164] ss:$132 sps:$4 sm:$0xff]  }
  0x4d   : > { %v2763_v61 = vld [vmem:[%s3051_s28 + $0x50] ss:$132 sps:$4 sm:$0xff]   ;;  %v2766_v62 = vld [vmem:[%s3051_s28 + $0x58] ss:$132 sps:$4 sm:$0xff]   ;;  %v2772_v3 = vld [vmem:[%s3051_s28 + $0x160] ss:$132 sps:$4 sm:$0xff]  }
  0x4e   : > { %920 = vmatpush1.bf16.msra.mxu0 %v2733_v41  ;;  %961 = vmatpush1.bf16.msra.mxu1 %v2736_v42  ;;  %v2769_v2 = vld [vmem:[%s3051_s28 + $0x158] ss:$132 sps:$4 sm:$0xff]   ;;  %v2777_v4 = vld [vmem:[%s3051_s28 + $0x64] ss:$132 sps:$4 sm:$0xff]   ;;  %v2780_v5 = vld [vmem:[%s3051_s28 + $0x6c] ss:$132 sps:$4 sm:$0xff]  }
  0x4f   : > { %999 = vmatprep.subr.bf16.mxu0 %v2741_v43  ;;  %1040 = vmatprep.subr.bf16.mxu1 %v2744_v44  ;;  %v2775_v6 = vld [vmem:[%s3051_s28 + $0x60] ss:$132 sps:$4 sm:$0xff]   ;;  %v2778_v7 = vld [vmem:[%s3051_s28 + $0x68] ss:$132 sps:$4 sm:$0xff]   ;;  %v2786_v27 = vld [vmem:[%s3051_s28 + $0x174] ss:$132 sps:$4 sm:$0xff]  }
  0x50   : > { %v2783_v8 = vld [vmem:[%s3051_s28 + $0x16c] ss:$132 sps:$4 sm:$0xff]   ;;  %v2789_v30 = vld [vmem:[%s3051_s28 + $0x74] ss:$132 sps:$4 sm:$0xff]   ;;  %v2792_v31 = vld [vmem:[%s3051_s28 + $0x7c] ss:$132 sps:$4 sm:$0xff]  }
  0x51   : > { %2470 = vmatmul.mubr.msk.bf16.vlgmr.msra.gmra.mrb[8].mxu0 %vm749_vm0, %v3089_v10  ;;  %2471 = vmatmul.mubr.msk.bf16.vlgmr.msra.gmra.mrb[8].mxu1 %vm749_vm0, %v3089_v10  ;;  %v2781_v28 = vld [vmem:[%s3051_s28 + $0x168] ss:$132 sps:$4 sm:$0xff]   ;;  %v2784_v29 = vld [vmem:[%s3051_s28 + $0x170] ss:$132 sps:$4 sm:$0xff]   ;;  %v2790_v33 = vld [vmem:[%s3051_s28 + $0x78] ss:$132 sps:$4 sm:$0xff]  }
  0x52   : > { %1000 = vmatpush1.bf16.msra.mxu0 %v2739_v45  ;;  %1041 = vmatpush1.bf16.msra.mxu1 %v2742_v46  ;;  %v2787_v32 = vld [vmem:[%s3051_s28 + $0x70] ss:$132 sps:$4 sm:$0xff]   ;;  %v2795_v34 = vld [vmem:[%s3051_s28 + $0x17c] ss:$132 sps:$4 sm:$0xff]   ;;  %v2798_v35 = vld [vmem:[%s3051_s28 + $0x184] ss:$132 sps:$4 sm:$0xff]  }
  0x53   : > { %1001 = vmatprep.subr.bf16.mxu0 %v2747_v47  ;;  %1042 = vmatprep.subr.bf16.mxu1 %v2750_v48  ;;  %v2793_v36 = vld [vmem:[%s3051_s28 + $0x178] ss:$132 sps:$4 sm:$0xff]   ;;  %v2796_v37 = vld [vmem:[%s3051_s28 + $0x180] ss:$132 sps:$4 sm:$0xff]   ;;  %v2914_v39 = vmov 0.0  }
  0x54   : > { %1031 = vmatprep.mubr.bf16.mxu0 %v2913_v0  ;;  %1072 = vmatprep.mubr.bf16.mxu1 %v2913_v0  ;;  %v2799_v38 = vld [vmem:[%s3051_s28 + $0x80] ss:$132 sps:$4 sm:$0xff]   ;;  %v2800_v40 = vld [vmem:[%s3051_s28 + $0x188] ss:$132 sps:$4 sm:$0xff]   ;;  %v2916_v47 = vmov 1983009808  }
  0x55   : > { %v1487_v48 = vunpack.c.l.s4 %v2916_v47  ;;  %vm1973_vm3 = vsmask.f32 256  ;;  %s3328_s28 = smov 0  }
  0x56   : > { %1002 = vmatpush1.bf16.msra.mxu0 %v2745_v49  ;;  %1043 = vmatpush1.bf16.msra.mxu1 %v2748_v50  ;;  %v1489_v49 = vlaneseq  ;;  %vm3303_vm4 = vmand %vm1972_vm2, %vm1973_vm3 }
  0x57   : > { %1081 = vmatprep.subr.bf16.mxu0 %v2753_v51  ;;  %1122 = vmatprep.subr.bf16.mxu1 %v2756_v52  ;;  %v1488_v52 = vunpack.c.0.s8 %v1487_v48 }
  0x59   : > { %2472 = vmatmul.mubr.msk.bf16.vlgmr.msra.gmra.mrb[12].mxu0 %vm749_vm0, %v3089_v10  ;;  %2473 = vmatmul.mubr.msk.bf16.vlgmr.msra.gmra.mrb[12].mxu1 %vm749_vm0, %v3089_v10 }
  0x5a   : > { %1082 = vmatpush1.bf16.msra.mxu0 %v2751_v53  ;;  %1123 = vmatpush1.bf16.msra.mxu1 %v2754_v54  ;;  %v1490_v53 = vshrl.u32 %v1489_v49, 7 }
  0x5b   : > { %1083 = vmatprep.subr.bf16.mxu0 %v2759_v55  ;;  %1124 = vmatprep.subr.bf16.mxu1 %v2762_v56 }
  0x5c   : > { %1113 = vmatprep.mubr.bf16.mxu0 %v2913_v0  ;;  %1154 = vmatprep.mubr.bf16.mxu1 %v2913_v0  ;;  %v3245_v54 = vsub.s32 %v1488_v52, %v1490_v53 }
  0x5e   : > { %1084 = vmatpush1.bf16.msra.mxu0 %v2757_v57  ;;  %1125 = vmatpush1.bf16.msra.mxu1 %v2760_v58 }
  0x5f   : > { %1163 = vmatprep.subr.bf16.mxu0 %v2765_v59  ;;  %1204 = vmatprep.subr.bf16.mxu1 %v2768_v60 }
  0x61   : > { %2474 = vmatmul.mubr.msk.bf16.vlgmr.msra.gmra.mrb[16].mxu0 %vm749_vm0, %v3089_v10  ;;  %2475 = vmatmul.mubr.msk.bf16.vlgmr.msra.gmra.mrb[16].mxu1 %vm749_vm0, %v3089_v10 }
  0x62   : > { %1164 = vmatpush1.bf16.msra.mxu0 %v2763_v61  ;;  %1205 = vmatpush1.bf16.msra.mxu1 %v2766_v62 }
  0x63   : > { %1165 = vmatprep.subr.bf16.mxu0 %v2771_v63  ;;  %1206 = vmatprep.subr.bf16.mxu1 %v2774_v1 }
  0x64   : > { %1195 = vmatprep.mubr.bf16.mxu0 %v2913_v0  ;;  %1236 = vmatprep.mubr.bf16.mxu1 %v2913_v0 }
  0x66   : > { %1166 = vmatpush1.bf16.msra.mxu0 %v2769_v2  ;;  %1207 = vmatpush1.bf16.msra.mxu1 %v2772_v3 }
  0x67   : > { %1245 = vmatprep.subr.bf16.mxu0 %v2777_v4  ;;  %1286 = vmatprep.subr.bf16.mxu1 %v2780_v5 }
  0x69   : > { %2476 = vmatmul.mubr.msk.bf16.vlgmr.msra.gmra.mrb[20].mxu0 %vm749_vm0, %v3089_v10  ;;  %2477 = vmatmul.mubr.msk.bf16.vlgmr.msra.gmra.mrb[20].mxu1 %vm749_vm0, %v3089_v10 }
  0x6a   : > { %1246 = vmatpush1.bf16.msra.mxu0 %v2775_v6  ;;  %1287 = vmatpush1.bf16.msra.mxu1 %v2778_v7 }
  0x6b   : > { %1247 = vmatprep.subr.bf16.mxu0 %v2783_v8  ;;  %1288 = vmatprep.subr.bf16.mxu1 %v2786_v27 }
  0x6c   : > { %1277 = vmatprep.mubr.bf16.mxu0 %v2913_v0  ;;  %1318 = vmatprep.mubr.bf16.mxu1 %v2913_v0 }
  0x6e   : > { %1248 = vmatpush1.bf16.msra.mxu0 %v2781_v28  ;;  %1289 = vmatpush1.bf16.msra.mxu1 %v2784_v29 }
  0x6f   : > { %1327 = vmatprep.subr.bf16.mxu0 %v2789_v30  ;;  %1368 = vmatprep.subr.bf16.mxu1 %v2792_v31 }
  0x71   : > { %2478 = vmatmul.mubr.msk.bf16.vlgmr.msra.gmra.mrb[24].mxu0 %vm749_vm0, %v3089_v10  ;;  %2479 = vmatmul.mubr.msk.bf16.vlgmr.msra.gmra.mrb[24].mxu1 %vm749_vm0, %v3089_v10 }
  0x72   : > { %1328 = vmatpush1.bf16.msra.mxu0 %v2787_v32  ;;  %1369 = vmatpush1.bf16.msra.mxu1 %v2790_v33 }
  0x73   : > { %1329 = vmatprep.subr.bf16.mxu0 %v2795_v34  ;;  %1370 = vmatprep.subr.bf16.mxu1 %v2798_v35 }
  0x74   : > { %1359 = vmatprep.mubr.bf16.mxu0 %v2913_v0  ;;  %1400 = vmatprep.mubr.bf16.mxu1 %v2913_v0 }
  0x76   : > { %1330 = vmatpush1.bf16.msra.mxu0 %v2793_v36  ;;  %1371 = vmatpush1.bf16.msra.mxu1 %v2796_v37  ;;  %v2917_v36 = vmov 1934713408  }
  0x77   : > { %2573 = vmatprep.subr.bf16.mxu0 %v2914_v39  ;;  %v1520_v37 = vunpack.c.l.s4 %v2917_v36 }
  0x79   : > { %2480 = vmatmul.mubr.msk.bf16.vlgmr.msra.gmra.mrb[28].mxu0 %vm749_vm0, %v3089_v10  ;;  %2481 = vmatmul.mubr.msk.bf16.vlgmr.msra.gmra.mrb[28].mxu1 %vm749_vm0, %v3089_v10 }
  0x7a   : > { %2574 = vmatpush3.bf16.msra.mxu0 %v2799_v38  ;;  %2577 = vmatprep.mubr.msk.bf16.mxu0 %vm2915_vm1, %v2914_v39 }
  0x7b   : > { %2575 = vmatprep.subr.bf16.mxu0 %v2914_v39  ;;  %v1521_v39 = vunpack.c.0.s8 %v1520_v37 }
  0x7d   : > { %v3252_v52 = vsub.s32 %v1521_v39, %v1490_v53 }
  0x7e   : > { %2576 = vmatpush3.bf16.msra.mxu0 %v2800_v40 }
  0x81   : > { %2578 = vmatmul.mubr.msk.bf16.vlgmr.msra.gmra.mrb[32].mxu0 %vm749_vm0, %v3089_v10 }
 0x113   : > { %v787_v41 = vpop.f32.mrb[0].mxu0  ;;  %v828_v42 = vpop.f32.mrb[0].mxu1 }
 0x114   : > { %v789_v43 = vpop.f32.mrb[1].mxu0  ;;  %v830_v44 = vpop.f32.mrb[1].mxu1 }
 0x115   : > { %v791_v45 = vpop.f32.mrb[2].mxu0  ;;  %v832_v46 = vpop.f32.mrb[2].mxu1 }
 0x116   : > { %v792_v50 = vpop.f32.mrb[3].mxu0  ;;  %v833_v51 = vpop.f32.mrb[3].mxu1 }
 0x11c   : > { %v869_v55 = vpop.f32.mrb[4].mxu0  ;;  %v910_v57 = vpop.f32.mrb[4].mxu1 }
 0x11d   : > { %v2483_v56 = vpack.c.bf16 %v869_v55, %v787_v41  ;;  %v871_v58 = vpop.f32.mrb[5].mxu0  ;;  %v2484_v10 = vpack.c.bf16 %v910_v57, %v828_v42  ;;  %v912_v60 = vpop.f32.mrb[5].mxu1 }
 0x11e   : > { %v2487_v59 = vpack.c.bf16 %v871_v58, %v789_v43  ;;  %v873_v61 = vpop.f32.mrb[6].mxu0  ;;  %v2488_v63 = vpack.c.bf16 %v912_v60, %v830_v44  ;;  %v914_v2 = vpop.f32.mrb[6].mxu1 }
 0x11f   : > { %v1492_v62 = vrot.slane %v2483_v56, %v3245_v54  ;;  %v874_v1 = vpop.f32.mrb[7].mxu0  ;;  %v1500_v3 = vrot.slane %v2484_v10, %v3245_v54  ;;  %v915_v5 = vpop.f32.mrb[7].mxu1 }
 0x120   : > { %v1560_v4 = vrot.slane %v2487_v59, %v3245_v54  ;;  %v1568_v6 = vrot.slane %v2488_v63, %v3245_v54 }
 0x121   : > { %v1517_v7 = vcombine.low %v1492_v62, %v1500_v3  ;;  %v1518_v8 = vcombine.high %v1492_v62, %v1500_v3 }
 0x122   : > { %v1585_v27 = vcombine.low %v1560_v4, %v1568_v6  ;;  %v1586_v28 = vcombine.high %v1560_v4, %v1568_v6 }
 0x123   : > { %v1525_v62 = vrot.slane %v1517_v7, %v3252_v52  ;;  %v1532_v63 = vrot.slane %v1518_v8, %v3252_v52 }
 0x124   : > { %v951_v29 = vpop.f32.mrb[8].mxu0  ;;  %v992_v31 = vpop.f32.mrb[8].mxu1  ;;  %v1593_v3 = vrot.slane %v1585_v27, %v3252_v52  ;;  %v1600_v4 = vrot.slane %v1586_v28, %v3252_v52 }
 0x125   : > { %v953_v30 = vpop.f32.mrb[9].mxu0  ;;  %v994_v33 = vpop.f32.mrb[9].mxu1 }
 0x126   : > { %v955_v32 = vpop.f32.mrb[10].mxu0  ;;  %v996_v35 = vpop.f32.mrb[10].mxu1 }
 0x127   : > { %v956_v34 = vpop.f32.mrb[11].mxu0  ;;  %v997_v38 = vpop.f32.mrb[11].mxu1 }
 0x12c   : > { %v1033_v40 = vpop.f32.mrb[12].mxu0  ;;  %v1074_v42 = vpop.f32.mrb[12].mxu1 }
 0x12d   : > { %v2485_v41 = vpack.c.bf16 %v1033_v40, %v951_v29  ;;  %v1035_v43 = vpop.f32.mrb[13].mxu0  ;;  %v2486_v44 = vpack.c.bf16 %v1074_v42, %v992_v31  ;;  %v1076_v46 = vpop.f32.mrb[13].mxu1 }
 0x12e   : > { %v2489_v45 = vpack.c.bf16 %v1035_v43, %v953_v30  ;;  %v1037_v47 = vpop.f32.mrb[14].mxu0  ;;  %v2490_v49 = vpack.c.bf16 %v1076_v46, %v994_v33  ;;  %v1078_v51 = vpop.f32.mrb[14].mxu1 }
 0x12f   : > { %v1508_v48 = vrot.slane %v2485_v41, %v3245_v54  ;;  %v1038_v50 = vpop.f32.mrb[15].mxu0  ;;  %v1516_v55 = vrot.slane %v2486_v44, %v3245_v54  ;;  %v1079_v57 = vpop.f32.mrb[15].mxu1 }
 0x130   : > { %v1576_v56 = vrot.slane %v2489_v45, %v3245_v54  ;;  %v1584_v58 = vrot.slane %v2490_v49, %v3245_v54 }
 0x131   : > { %v1533_v10 = vcombine.low %v1508_v48, %v1516_v55  ;;  %v1534_v59 = vcombine.high %v1508_v48, %v1516_v55 }
 0x132   : > { %v1601_v60 = vcombine.low %v1576_v56, %v1584_v58  ;;  %v1602_v61 = vcombine.high %v1576_v56, %v1584_v58 }
 0x133   : > { %v1541_v1 = vrot.slane %v1533_v10, %v3252_v52  ;;  %v1548_v53 = vrot.slane %v1534_v59, %v3252_v52 }
 0x134   : > { %v3261_v2 = vpop.f32.mrb[16].mxu0  ;;  %v1609_v5 = vrot.slane %v1601_v60, %v3252_v52  ;;  %v1616_v6 = vrot.slane %v1602_v61, %v3252_v52  ;;  %v3269_v30 = vpop.f32.mrb[16].mxu1 }
 0x135   : > { %v3267_v29 = vpop.f32.mrb[17].mxu0  ;;  %v1549_v7 = vcombine.low %v1525_v62, %v1541_v1  ;;  %v1550_v8 = vcombine.high %v1525_v62, %v1541_v1  ;;  %v1551_v31 = vcombine.low %v1532_v63, %v1548_v53  ;;  %v1552_v32 = vcombine.high %v1532_v63, %v1548_v53  ;;  %v3271_v34 = vpop.f32.mrb[17].mxu1 }
 0x136   : > { %v1119_v33 = vpop.f32.mrb[18].mxu0  ;;  %v1617_v35 = vcombine.low %v1593_v3, %v1609_v5  ;;  %v1618_v36 = vcombine.high %v1593_v3, %v1609_v5  ;;  %v1619_v27 = vcombine.low %v1600_v4, %v1616_v6  ;;  %v1620_v37 = vcombine.high %v1600_v4, %v1616_v6  ;;  %v1160_v38 = vpop.f32.mrb[18].mxu1 }
 0x137   : > { %v1120_v28 = vpop.f32.mrb[19].mxu0  ;;  %v1785_v39 = vshrl.u32 %v1549_v7, 16  ;;  %v1791_v40 = vshrl.u32 %v1550_v8, 16  ;;  %v1797_v41 = vshrl.u32 %v1551_v31, 16  ;;  %v1803_v42 = vshrl.u32 %v1552_v32, 16  ;;  %v1161_v43 = vpop.f32.mrb[19].mxu1 }
 0x138   : > { %v1784_v44 = vpack.i.b16 %v1617_v35, %v1549_v7  ;;  %v1786_v45 = vshrl.u32 %v1617_v35, 16  ;;  %v1790_v46 = vpack.i.b16 %v1618_v36, %v1550_v8  ;;  %v1792_v47 = vshrl.u32 %v1618_v36, 16 }
 0x139   : > { %v1796_v48 = vpack.i.b16 %v1619_v27, %v1551_v31  ;;  %v1798_v49 = vshrl.u32 %v1619_v27, 16  ;;  %v1802_v50 = vpack.i.b16 %v1620_v37, %v1552_v32  ;;  %v1804_v51 = vshrl.u32 %v1620_v37, 16 }
 0x13a   : > { %v1787_v55 = vpack.i.b16 %v1786_v45, %v1785_v39  ;;  %v1793_v56 = vpack.i.b16 %v1792_v47, %v1791_v40  ;;  %v2499_v57 = vcombine.low %v1784_v44, %v1784_v44  ;;  %v2500_v58 = vcombine.high %v1784_v44, %v1784_v44 }
 0x13b   : > { %v1799_v10 = vpack.i.b16 %v1798_v49, %v1797_v41  ;;  %v1805_v59 = vpack.i.b16 %v1804_v51, %v1803_v42  ;;  %v2509_v60 = vcombine.low %v1790_v46, %v1790_v46  ;;  %v2510_v61 = vcombine.high %v1790_v46, %v1790_v46 }
 0x13c   : > { %v1197_v62 = vpop.f32.mrb[20].mxu0  ;;  %v2504_v63 = vcombine.low %v1787_v55, %v1787_v55  ;;  %v2505_v1 = vcombine.high %v1787_v55, %v1787_v55  ;;  %v2514_v53 = vcombine.low %v1793_v56, %v1793_v56  ;;  %v2515_v3 = vcombine.high %v1793_v56, %v1793_v56  ;;  %1968 = vst [vmem:[#allocation2] sm:$0xf] %v2499_v57  ;;  %v1238_v4 = vpop.f32.mrb[20].mxu1 }
 0x13d   : > { %1969 = vst [vmem:[#allocation2 + $0x4] sm:$0xf] %v2500_v58  ;;  %v1199_v5 = vpop.f32.mrb[21].mxu0  ;;  %v2519_v6 = vcombine.low %v1796_v48, %v1796_v48  ;;  %v2520_v7 = vcombine.high %v1796_v48, %v1796_v48  ;;  %v2524_v8 = vcombine.low %v1799_v10, %v1799_v10  ;;  %v2525_v31 = vcombine.high %v1799_v10, %v1799_v10  ;;  %v1240_v32 = vpop.f32.mrb[21].mxu1 }
 0x13e   : > { %1985 = vst [vmem:[#allocation2 + $0x28] sm:$0xf] %v2509_v60  ;;  %1986 = vst [vmem:[#allocation2 + $0x2c] sm:$0xf] %v2510_v61  ;;  %v1201_v33 = vpop.f32.mrb[22].mxu0  ;;  %v2529_v35 = vcombine.low %v1802_v50, %v1802_v50  ;;  %v2530_v36 = vcombine.high %v1802_v50, %v1802_v50  ;;  %v2534_v27 = vcombine.low %v1805_v59, %v1805_v59  ;;  %v1242_v38 = vpop.f32.mrb[22].mxu1 }
 0x13f   : > { %v2535_v37 = vcombine.high %v1805_v59, %v1805_v59  ;;  %1978 = vst [vmem:[#allocation2 + $0x14] sm:$0xf] %v2504_v63  ;;  %1979 = vst [vmem:[#allocation2 + $0x18] sm:$0xf] %v2505_v1  ;;  %v1202_v28 = vpop.f32.mrb[23].mxu0  ;;  %v2491_v39 = vpack.c.bf16 %v1197_v62, %v3261_v2  ;;  %v2492_v40 = vpack.c.bf16 %v1238_v4, %v3269_v30  ;;  %v1243_v43 = vpop.f32.mrb[23].mxu1 }
 0x140   : > { %1992 = vst [vmem:[#allocation2 + $0x3c] sm:$0xf] %v2514_v53  ;;  %1993 = vst [vmem:[#allocation2 + $0x40] sm:$0xf] %v2515_v3  ;;  %v2495_v41 = vpack.c.bf16 %v1199_v5, %v3267_v29  ;;  %v2496_v42 = vpack.c.bf16 %v1240_v32, %v3271_v34 }
 0x141   : > { %1999 = vst [vmem:[#allocation2 + $0x50] sm:$0xf] %v2519_v6  ;;  %2000 = vst [vmem:[#allocation2 + $0x54] sm:$0xf] %v2520_v7  ;;  %v1628_v44 = vrot.slane %v2491_v39, %v3245_v54  ;;  %v1636_v45 = vrot.slane %v2492_v40, %v3245_v54 }
 0x142   : > { %2006 = vst [vmem:[#allocation2 + $0x64] sm:$0xf] %v2524_v8  ;;  %2007 = vst [vmem:[#allocation2 + $0x68] sm:$0xf] %v2525_v31  ;;  %v1696_v46 = vrot.slane %v2495_v41, %v3245_v54  ;;  %v1704_v47 = vrot.slane %v2496_v42, %v3245_v54 }
 0x143   : > { %2013 = vst [vmem:[#allocation2 + $0x78] sm:$0xf] %v2529_v35  ;;  %2014 = vst [vmem:[#allocation2 + $0x7c] sm:$0xf] %v2530_v36  ;;  %v1653_v2 = vcombine.low %v1628_v44, %v1636_v45  ;;  %v1654_v48 = vcombine.high %v1628_v44, %v1636_v45 }
 0x144   : > { %2020 = vst [vmem:[#allocation2 + $0x8c] sm:$0xf] %v2534_v27  ;;  %2021 = vst [vmem:[#allocation2 + $0x90] sm:$0xf] %v2535_v37  ;;  %v1721_v30 = vcombine.low %v1696_v46, %v1704_v47  ;;  %v1722_v49 = vcombine.high %v1696_v46, %v1704_v47  ;;  %v1279_v29 = vpop.f32.mrb[24].mxu0  ;;  %v1320_v34 = vpop.f32.mrb[24].mxu1 }
 0x145   : > { %v1281_v50 = vpop.f32.mrb[25].mxu0  ;;  %v1322_v55 = vpop.f32.mrb[25].mxu1  ;;  %v1661_v36 = vrot.slane %v1653_v2, %v3252_v52  ;;  %v1668_v28 = vrot.slane %v1654_v48, %v3252_v52 }
 0x146   : > { %v1283_v51 = vpop.f32.mrb[26].mxu0  ;;  %v1324_v57 = vpop.f32.mrb[26].mxu1  ;;  %v1729_v38 = vrot.slane %v1721_v30, %v3252_v52  ;;  %v1736_v42 = vrot.slane %v1722_v49, %v3252_v52 }
 0x147   : > { %v1284_v56 = vpop.f32.mrb[27].mxu0  ;;  %v1325_v58 = vpop.f32.mrb[27].mxu1 }
 0x14c   : > { %v1361_v10 = vpop.f32.mrb[28].mxu0  ;;  %v1402_v60 = vpop.f32.mrb[28].mxu1 }
 0x14d   : > { %v2493_v59 = vpack.c.bf16 %v1361_v10, %v1279_v29  ;;  %v1363_v61 = vpop.f32.mrb[29].mxu0  ;;  %v2494_v62 = vpack.c.bf16 %v1402_v60, %v1320_v34  ;;  %v1404_v1 = vpop.f32.mrb[29].mxu1 }
 0x14e   : > { %v2497_v63 = vpack.c.bf16 %v1363_v61, %v1281_v50  ;;  %v1365_v53 = vpop.f32.mrb[30].mxu0  ;;  %v2498_v4 = vpack.c.bf16 %v1404_v1, %v1322_v55  ;;  %v1406_v6 = vpop.f32.mrb[30].mxu1 }
 0x14f   : > { %v1644_v3 = vrot.slane %v2493_v59, %v3245_v54  ;;  %v1366_v5 = vpop.f32.mrb[31].mxu0  ;;  %v1652_v7 = vrot.slane %v2494_v62, %v3245_v54  ;;  %v1407_v31 = vpop.f32.mrb[31].mxu1 }
 0x150   : > { %v1712_v8 = vrot.slane %v2497_v63, %v3245_v54  ;;  %v1720_v32 = vrot.slane %v2498_v4, %v3245_v54 }
 0x151   : > { %v1669_v33 = vcombine.low %v1644_v3, %v1652_v7  ;;  %v1670_v35 = vcombine.high %v1644_v3, %v1652_v7 }
 0x152   : > { %v1737_v27 = vcombine.low %v1712_v8, %v1720_v32  ;;  %v1738_v37 = vcombine.high %v1712_v8, %v1720_v32 }
 0x153   : > { %v1677_v39 = vrot.slane %v1669_v33, %v3252_v52  ;;  %v1684_v40 = vrot.slane %v1670_v35, %v3252_v52 }
 0x154   : > { %v1443_v41 = vpop.f32.mrb[32].mxu0  ;;  %v1745_v43 = vrot.slane %v1737_v27, %v3252_v52  ;;  %v1752_v44 = vrot.slane %v1738_v37, %v3252_v52 }
 0x155   : > { %v1757_v45 = vpack.c.bf16 %v1443_v41, %v1443_v41  ;;  %v2579_v46 = vpop.f32.mrb[33].mxu0  ;;  %v1685_v47 = vcombine.low %v1661_v36, %v1677_v39  ;;  %v1686_v2 = vcombine.high %v1661_v36, %v1677_v39  ;;  %v1687_v29 = vcombine.low %v1668_v28, %v1684_v40 }
 0x156   : > { %v1688_v50 = vcombine.high %v1668_v28, %v1684_v40  ;;  %v1446_v48 = vpop.f32.mrb[34].mxu0  ;;  %v1753_v34 = vcombine.low %v1729_v38, %v1745_v43  ;;  %v1754_v30 = vcombine.high %v1729_v38, %v1745_v43  ;;  %v1755_v51 = vcombine.low %v1736_v42, %v1752_v44 }
 0x157   : > { %v1756_v55 = vcombine.high %v1736_v42, %v1752_v44  ;;  %v2580_v56 = vpop.f32.mrb[35].mxu0  ;;  %v1809_v57 = vshrl.u32 %v1685_v47, 16  ;;  %v1815_v58 = vshrl.u32 %v1686_v2, 16  ;;  %v1821_v10 = vshrl.u32 %v1687_v29, 16 }
 0x158   : > { %v1827_v49 = vshrl.u32 %v1688_v50, 16  ;;  %v1808_v59 = vpack.i.b16 %v1753_v34, %v1685_v47  ;;  %v1810_v60 = vshrl.u32 %v1753_v34, 16  ;;  %v1814_v61 = vpack.i.b16 %v1754_v30, %v1686_v2  ;;  %v1975_v56 = vld [vmem:[#allocation2 + $0x10] sm:$0x1] }
 0x159   : > { %v1816_v62 = vshrl.u32 %v1754_v30, 16  ;;  %v1820_v63 = vpack.i.b16 %v1755_v51, %v1687_v29  ;;  %v1822_v1 = vshrl.u32 %v1755_v51, 16  ;;  %v1826_v53 = vpack.i.b16 %v1756_v55, %v1688_v50 }
 0x15a   : > { %v1828_v3 = vshrl.u32 %v1756_v55, 16  ;;  %v1811_v4 = vpack.i.b16 %v1810_v60, %v1809_v57  ;;  %v2501_v6 = vcombine.low %v1808_v59, %v1808_v59  ;;  %v2502_v7 = vcombine.high %v1808_v59, %v1808_v59 }
 0x15b   : > { %v1817_v5 = vpack.i.b16 %v1816_v62, %v1815_v58  ;;  %v1823_v8 = vpack.i.b16 %v1822_v1, %v1821_v10  ;;  %v2511_v32 = vcombine.low %v1814_v61, %v1814_v61  ;;  %v2512_v33 = vcombine.high %v1814_v61, %v1814_v61  ;;  %v1982_v10 = vld [vmem:[#allocation2 + $0x24] sm:$0x1]  ;;  %v1989_v62 = vld [vmem:[#allocation2 + $0x38] sm:$0x1] }
 0x15c   : > { %v1829_v31 = vpack.i.b16 %v1828_v3, %v1827_v49  ;;  %v2506_v35 = vcombine.low %v1811_v4, %v1811_v4  ;;  %v2507_v36 = vcombine.high %v1811_v4, %v1811_v4  ;;  %1970 = vst [vmem:[#allocation2 + $0x8] sm:$0xf] %v2501_v6  ;;  %1971 = vst [vmem:[#allocation2 + $0xc] sm:$0xf] %v2502_v7  ;;  %v2017_v6 = vld [vmem:[#allocation2 + $0x88] sm:$0x1] }
 0x15d   : > { %v2516_v27 = vcombine.low %v1817_v5, %v1817_v5  ;;  %v2517_v37 = vcombine.high %v1817_v5, %v1817_v5  ;;  %v2521_v28 = vcombine.low %v1820_v63, %v1820_v63  ;;  %v2522_v38 = vcombine.high %v1820_v63, %v1820_v63  ;;  %1987 = vst [vmem:[#allocation2 + $0x30] sm:$0xf] %v2511_v32  ;;  %v2003_v63 = vld [vmem:[#allocation2 + $0x60] sm:$0x1]  ;;  %v1996_v5 = vld [vmem:[#allocation2 + $0x4c] sm:$0x1] }
 0x15e   : > { %v2526_v39 = vcombine.low %v1823_v8, %v1823_v8  ;;  %v2527_v40 = vcombine.high %v1823_v8, %v1823_v8  ;;  %1988 = vst [vmem:[#allocation2 + $0x34] sm:$0xf] %v2512_v33  ;;  %v2531_v41 = vcombine.low %v1826_v53, %v1826_v53  ;;  %v2532_v42 = vcombine.high %v1826_v53, %v1826_v53  ;;  %v2010_v33 = vld [vmem:[#allocation2 + $0x74] sm:$0x1] }
 0x15f   : > { %v2536_v43 = vcombine.low %v1829_v31, %v1829_v31  ;;  %v2537_v44 = vcombine.high %v1829_v31, %v1829_v31  ;;  %1980 = vst [vmem:[#allocation2 + $0x1c] sm:$0xf] %v2506_v35  ;;  %1981 = vst [vmem:[#allocation2 + $0x20] sm:$0xf] %v2507_v36  ;;  %v1764_v46 = vrot.slane %v1757_v45, %v3245_v54 }
 0x160   : > { %1994 = vst [vmem:[#allocation2 + $0x44] sm:$0xf] %v2516_v27  ;;  %1995 = vst [vmem:[#allocation2 + $0x48] sm:$0xf] %v2517_v37  ;;  %v2024_v37 = vld [vmem:[#allocation2 + $0x9c] sm:$0x1] }
 0x161   : > { %2001 = vst [vmem:[#allocation2 + $0x58] sm:$0xf] %v2521_v28  ;;  %2002 = vst [vmem:[#allocation2 + $0x5c] sm:$0xf] %v2522_v38  ;;  %v1765_v47 = vcombine.high %v1764_v46, %v2913_v0  ;;  %v1772_v2 = vrot.slane %v1764_v46, %v3252_v52 }
 0x162   : > { %2008 = vst [vmem:[#allocation2 + $0x6c] sm:$0xf] %v2526_v39  ;;  %2009 = vst [vmem:[#allocation2 + $0x70] sm:$0xf] %v2527_v40 }
 0x163   : > { %2015 = vst [vmem:[#allocation2 + $0x80] sm:$0xf] %v2531_v41  ;;  %2016 = vst [vmem:[#allocation2 + $0x84] sm:$0xf] %v2532_v42  ;;  %v1779_v29 = vrot.slane %v1765_v47, %v3252_v52  ;;  %v1780_v50 = vcombine.high %v1772_v2, %v2913_v0  ;;  %v1832_v48 = vpack.i.b16 %v2913_v0, %v1772_v2  ;;  %v1833_v34 = vshrl.u32 %v1772_v2, 16 }
 0x164   : > { %2022 = vst [vmem:[#allocation2 + $0x94] sm:$0xf] %v2536_v43  ;;  %2023 = vst [vmem:[#allocation2 + $0x98] sm:$0xf] %v2537_v44 }
 0x165   : > { %v1781_v30 = vcombine.high %v1779_v29, %v2913_v0  ;;  %v1835_v54 = vpack.i.b16 %v2913_v0, %v1833_v34  ;;  %v1837_v45 = vpack.i.b16 %v2913_v0, %v1780_v50  ;;  %v1838_v51 = vshrl.u32 %v1780_v50, 16 }
 0x166   : > { %v1841_v52 = vpack.i.b16 %v2913_v0, %v1779_v29  ;;  %v1842_v57 = vshrl.u32 %v1779_v29, 16  ;;  %v2503_v58 = vcombine.low %v1832_v48, %v1832_v48 }
 0x167   : > { %v1839_v49 = vpack.i.b16 %v2913_v0, %v1838_v51  ;;  %v1845_v59 = vpack.i.b16 %v2913_v0, %v1781_v30  ;;  %v1846_v60 = vshrl.u32 %v1781_v30, 16  ;;  %v2508_v61 = vcombine.low %v1835_v54, %v1835_v54 }
 0x168   : > { %v1843_v1 = vpack.i.b16 %v2913_v0, %v1842_v57  ;;  %v2513_v53 = vcombine.low %v1837_v45, %v1837_v45  ;;  %v2523_v3 = vcombine.low %v1841_v52, %v1841_v52  ;;  %v1976_v4 = vsel %vm3303_vm4, %v2503_v58, %v1975_v56 }
 0x169   : > { %v1847_v7 = vpack.i.b16 %v2913_v0, %v1846_v60  ;;  %v2518_v8 = vcombine.low %v1839_v49, %v1839_v49  ;;  %v2533_v31 = vcombine.low %v1845_v59, %v1845_v59  ;;  %1977 = vst [vmem:[#allocation2 + $0x10] sm:$0x1] %v1976_v4  ;;  %v1983_v32 = vsel %vm3303_vm4, %v2508_v61, %v1982_v10 }
 0x16a   : > { %v2528_v35 = vcombine.low %v1843_v1, %v1843_v1  ;;  %1984 = vst [vmem:[#allocation2 + $0x24] sm:$0x1] %v1983_v32  ;;  %v1990_v36 = vsel %vm3303_vm4, %v2513_v53, %v1989_v62  ;;  %v2004_v27 = vsel %vm3303_vm4, %v2523_v3, %v2003_v63 }
 0x16b   : > { %v2538_v28 = vcombine.low %v1847_v7, %v1847_v7  ;;  %1991 = vst [vmem:[#allocation2 + $0x38] sm:$0x1] %v1990_v36  ;;  %v1997_v0 = vsel %vm3303_vm4, %v2518_v8, %v1996_v5  ;;  %2005 = vst [vmem:[#allocation2 + $0x60] sm:$0x1] %v2004_v27  ;;  %v2018_v38 = vsel %vm3303_vm4, %v2533_v31, %v2017_v6 }
 0x16c   : > { %1998 = vst [vmem:[#allocation2 + $0x4c] sm:$0x1] %v1997_v0  ;;  %v2011_v39 = vsel %vm3303_vm4, %v2528_v35, %v2010_v33  ;;  %2019 = vst [vmem:[#allocation2 + $0x88] sm:$0x1] %v2018_v38 }
 0x16d   : > { %2012 = vst [vmem:[#allocation2 + $0x74] sm:$0x1] %v2011_v39  ;;  %v2025_v40 = vsel %vm3303_vm4, %v2538_v28, %v2024_v37 }
 0x16e   : > { %2026 = vst [vmem:[#allocation2 + $0x9c] sm:$0x1] %v2025_v40 }
 0x16f LB: >> { %v2918_v41 = vmov 0.0   ;;  %vm2919_vm5 = vmmov 0   ;;  %v2545_v42 = vcombine.low %v3092_v11, %v3095_v12  ;;  %s2556_s27 = smul.u32 20, %s2908_s28  ;;  %v2546_v43 = vcombine.low %v3098_v13, %v3101_v14  ;;  %s2539_s12 = sshll.u32 %s2908_s28, 3  ;;  %s2908_s28 = sphi %s3328_s28, %s2049_s28  }
 0x170   : >> { %2581 = vmatprep.subr.bf16.mxu0 %v2918_v41  ;;  %2587 = vmatprep.mubr.msk.bf16.mxu0 %vm2919_vm5, %v2918_v41  ;;  %v2547_v2 = vcombine.low %v3104_v15, %v3107_v16  ;;  %v2920_v29 = vmov 0   ;;  %v2548_v34 = vcombine.low %v3110_v17, %v3113_v18  ;;  %vm2074_vm6 = vcmask 269312   ;;  %s2213_s13 = scalar_lea.vmem %s3082_s5, %s2539_s12  ;;  %s2049_s28 = sadd.s32 1, %s2908_s28  }
 0x171   : >> { %2591 = vmatprep.subr.bf16.mxu1 %v2918_v41  ;;  %2607 = vmatprep.mubr.msk.bf16.mxu1 %vm2919_vm5, %v2918_v41  ;;  %s2053_s9 = scalar_lea.vmem [#allocation2], %s2556_s27  ;;  %v2080_v50 = vsel %vm1972_vm2, 65535, %v2920_v29  ;;  %v2549_v30 = vcombine.low %v3116_v19, %v3119_v20  ;;  %v2550_v54 = vcombine.low %v3122_v21, %v3125_v22  ;;  %v2551_v45 = vcombine.low %v3128_v23, %v3131_v24  ;;  %p2046_p7 = scmp.ge.s32.totalorder %s2049_s28, 8  }
 0x172   : >> { %2592 = vmatpush3.bf16.msra.mxu1 %v2545_v42  ;;  %v2552_v51 = vcombine.low %v3134_v25, %v3139_v26  ;;  %vm2214_vm7 = vcmask 64512  }
 0x173   : >> { %2593 = vmatprep.subr.bf16.mxu1 %v2918_v41 }
 0x175   : >> { %v2801_v44 = vld [vmem:[%s2053_s9] sm:$0xff]   ;;  %v2802_v46 = vld [vmem:[%s2053_s9 + $0x8] sm:$0xff]   ;;  %v2803_v47 = vld [vmem:[%s2053_s9 + $0x10] ss:$0 sps:$4 sm:$0x11]  }
 0x176   : >> { %2582 = vmatpush3.bf16.msra.mxu0 %v2801_v44  ;;  %2594 = vmatpush3.bf16.msra.mxu1 %v2546_v43  ;;  %v2082_v48 = vand.u32 %v2803_v47, %v2080_v50 }
 0x177   : >> { %2583 = vmatprep.subr.bf16.mxu0 %v2918_v41  ;;  %2595 = vmatprep.subr.bf16.mxu1 %v2918_v41 }
 0x17a   : >> { %2584 = vmatpush3.bf16.msra.mxu0 %v2802_v46  ;;  %2596 = vmatpush3.bf16.msra.mxu1 %v2547_v2 }
 0x17b   : >> { %2585 = vmatprep.subr.bf16.mxu0 %v2918_v41  ;;  %2597 = vmatprep.subr.bf16.mxu1 %v2918_v41 }
 0x17e   : >> { %2586 = vmatpush3.bf16.msra.mxu0 %v2082_v48  ;;  %2598 = vmatpush3.bf16.msra.mxu1 %v2548_v34 }
 0x17f   : >> { %2599 = vmatprep.subr.bf16.mxu1 %v2918_v41 }
 0x181   : >> { %2588 = vmatmul.mubr.msk.bf16.vlgmr.msra.gmra.mrb[0].mxu0 %vm2074_vm6, %v3087_v9 }
 0x182   : >> { %2600 = vmatpush3.bf16.msra.mxu1 %v2549_v30 }
 0x183   : >> { %2601 = vmatprep.subr.bf16.mxu1 %v2918_v41 }
 0x186   : >> { %2602 = vmatpush3.bf16.msra.mxu1 %v2550_v54 }
 0x187   : >> { %2603 = vmatprep.subr.bf16.mxu1 %v2918_v41 }
 0x18a   : >> { %2604 = vmatpush3.bf16.msra.mxu1 %v2551_v45 }
 0x18b   : >> { %2605 = vmatprep.subr.bf16.mxu1 %v2918_v41 }
 0x18e   : >> { %2606 = vmatpush3.bf16.msra.mxu1 %v2552_v51 }
 0x254   : >> { %v2118_v55 = vpop.f32.mrb[0].mxu0 }
 0x255   : >> { %v2124_v56 = vpack.c.bf16 %v2118_v55, %v2118_v55  ;;  %v2589_v52 = vpop.f32.mrb[1].mxu0 }
 0x256   : >> { %v2121_v57 = vpop.f32.mrb[2].mxu0 }
 0x257   : >> { %v2590_v58 = vpop.f32.mrb[3].mxu0  ;;  %2608 = vmatmul.mubr.bf16.vlgmr.msra.gmra.mrb[0].mxu1 %v2124_v56 }
 0x327   : > { %2048 = sbr.rel (!%p2046_p7) target bundleno = 367 (0x16f), region = 98 }
 0x32a   : >> { %v2207_v10 = vpop.f32.mrb[0].mxu1 }
 0x32b   : >> { %2215 = vst.msk [vmem:[%s2213_s13] sm:$0xff] %vm2214_vm7, %v2207_v10  ;;  %v2609_v49 = vpop.f32.mrb[1].mxu1 }
 0x32c   : >> { %v2210_v59 = vpop.f32.mrb[2].mxu1 }
 0x32d   : >> { %v2610_v60 = vpop.f32.mrb[3].mxu1 }
 0x32e PF: > { %s17_s22 = sadd.s32 1, %s2904_s22   ;;  %s3390_s15 = smov %s2880_s16 }
 0x32f   : > { %p14_p6 = scmp.ge.s32.totalorder %s17_s22, 6   ;;  %s3391_s16 = smov %s2884_s17 }
 0x330   : > { %s3392_s17 = smov %s3010_s6  ;;  %s3393_s18 = smov %s2896_s20 }
 0x331   : > { %s3394_s19 = smov %s2900_s21  ;;  %s3395_s20 = smov %s3398_s24 }
 0x332   : > { %s3396_s21 = smov %s3402_s25  ;;  %16 = sbr.rel (!%p14_p6) target bundleno = 5 (0x5), region = 109 }
 0x339   :  { %2254 = vsyncpa [#allocation4], 1 }
 0x33a   :  { %2256 = vsyncpa [#allocation4 + $0x1], 1 }

</bundles_post_ra>
